<compile_context>
chip_gen: v6e
topology: v6e:2x2x1
jax: 0.10.0
libtpu: 0.0.40
codegen_flags: <defaults>
</compile_context>

<pallas_src>
import functools

import numpy as np
import jax
import jax.numpy as jnp
from jax.experimental import pallas as pl
from jax.experimental.pallas import tpu as pltpu


def _vmem_limit_bytes():
    """Generation-aware scoped-VMEM limit (~48 MiB on v7x, more on v5e/v6e)."""
    try:
        cap = int(getattr(pltpu.get_tpu_info(), "vmem_capacity_bytes", 64 << 20))
    except Exception:  # info unavailable -> conservative default
        cap = 64 << 20
    return max(16 << 20, min(3 * cap // 4, 96 << 20))


def _pick_tile_h(height, width, vmem_budget_bytes, target_steps=8):
    """Row tile: multiple of 8, fits the VMEM budget, AND leaves the grid with
    ~target_steps steps so double-buffering overlaps DMA with compute and the
    "parallel" row axis can be sharded across both v7x TensorCores."""
    if height <= 8:
        return height
    # Per grid step (double-buffered): depth in 4 B/px + 2x int32 planes out 8 B/px.
    bytes_per_row = 2 * (4 + 8) * width
    th_mem = max(8, (vmem_budget_bytes // bytes_per_row) // 8 * 8)
    th_pipe = max(8, ((-(-height // target_steps)) + 7) // 8 * 8)
    th = max(8, (min(height, th_mem, th_pipe) // 8) * 8)
    # Prefer an exact divisor of `height` so every tile is full (no ragged tail).
    for cand in range(th, 7, -8):
        if height % cand == 0:
            return cand
    return th  # ragged last tile; Pallas masks the out-of-bounds rows.


def _project_kernel(depth_ref, idx_ref, *, tile_h, scale,
                    u_mul, u_add, v_mul, v_add,
                    rgb_cx, rgb_cy, rgb_fx, rgb_fy,
                    width, height, rot, trans):
    """Fused DepthImage2Point + Point2Point + Point2Pixel + corner encoding.

    depth_ref : [TH, W] f32   depth tile
    idx_ref   : [2, TH, W] i32
        plane 0: flat00 = py0*W + px0 (always in-frame by construction)
        plane 1: 4-bit corner code: dx | dy<<1 | (px1>=W)<<2 | (py1>=H)<<3
    The wrapper reconstructs the 4 corner indices from the two planes, so the
    kernel writes 8 B/px instead of 16 B/px.
    """
    th, w = depth_ref.shape
    d = depth_ref[...]

    # --- DepthImage2Point: u/v maps generated on the VPU (no HBM reads);
    #     constant divides folded into one mul + add per map at trace time. ---
    row0 = pl.program_id(0) * tile_h
    col_i = jax.lax.broadcasted_iota(jnp.int32, (th, w), 1)
    row_i = jax.lax.broadcasted_iota(jnp.int32, (th, w), 0) + row0
    u = col_i.astype(jnp.float32) * u_mul + u_add
    v = row_i.astype(jnp.float32) * v_mul + v_add

    px = d * u
    py = d * v
    pz = d if scale == 1.0 else d * scale

    # --- Point2Point: unrolled 3x3 rotate, calibration baked as constants. ---
    (r00, r01, r02), (r10, r11, r12), (r20, r21, r22) = rot
    t0, t1, t2 = trans
    X = px * r00 + py * r10 + pz * r20 + t0
    Y = px * r01 + py * r11 + pz * r21 + t1
    Z = px * r02 + py * r12 + pz * r22 + t2

    # --- Point2Pixel: one exact reciprocal + VPU multiplies; zero where Z==0.
    #     (approx reciprocal could flip trunc(x +/- 0.5) on .5 boundaries.) ---
    zero = jnp.zeros_like(Z)
    z_is_zero = Z == 0.0
    inv_z = 1.0 / jnp.where(z_is_zero, 1.0, Z)
    x = jnp.where(z_is_zero, zero, X * inv_z * rgb_fx + rgb_cx)
    y = jnp.where(z_is_zero, zero, Y * inv_z * rgb_fy + rgb_cy)

    # Out-of-frame mask, then zero the masked coords (matches p_x[mask] = 0).
    mask = (x < 0.0) | (x >= float(width)) | (y < 0.0) | (y >= float(height))
    x = jnp.where(mask, zero, x)
    y = jnp.where(mask, zero, y)

    # f32->i32 cast truncates toward zero, same as torch .to(torch.int64).
    px0 = (x - 0.5).astype(jnp.int32)
    px1 = (x + 0.5).astype(jnp.int32)
    py0 = (y - 0.5).astype(jnp.int32)
    py1 = (y + 0.5).astype(jnp.int32)

    # plane 0: (py0, px0) is always in-frame after the mask -> no select needed.
    idx_ref[0] = py0 * width + px0
    # plane 1: compact corner code (dx, dy in {0,1}; px1/py1 can only reach W/H).
    dx = px1 - px0
    dy = py1 - py0
    xoob = (px1 >= width).astype(jnp.int32)
    yoob = (py1 >= height).astype(jnp.int32)
    idx_ref[1] = dx + dy * 2 + xoob * 4 + yoob * 8


class DepthAlignment:
    FILL = 10000.0

    def __init__(self, scale, width, height,
                 depth_cx, depth_cy, depth_fx, depth_fy,
                 rgb_cx, rgb_cy, rgb_fx, rgb_fy,
                 rotation, translation):
        self.scale = float(scale)
        self.width = int(width)
        self.height = int(height)
        self.rgb_intr = (float(rgb_cx), float(rgb_cy),
                         float(rgb_fx), float(rgb_fy))
        # DepthImage2Point constant divides folded into (mul, add) pairs.
        self.u_mul = float(scale) / float(depth_fx)
        self.u_add = -float(depth_cx) * float(scale) / float(depth_fx)
        self.v_mul = float(scale) / float(depth_fy)
        self.v_add = -float(depth_cy) * float(scale) / float(depth_fy)
        rot = np.asarray(rotation, dtype=np.float32).reshape(3, 3)
        tr = np.asarray(translation, dtype=np.float32).reshape(3)
        # Calibration is fixed per module instance -> compile-time constants.
        self.rot = tuple(tuple(float(x) for x in row) for row in rot)
        self.trans = tuple(float(x) for x in tr)
        self.vmem_limit = _vmem_limit_bytes()
        # Size tiles against half the scoped limit (headroom for Mosaic
        # internal scratch) while forcing ~8 grid steps for pipelining.
        self.tile_h = _pick_tile_h(self.height, self.width, self.vmem_limit // 2)

    def __call__(self, depth_image):
        H, W = self.height, self.width
        TH = self.tile_h
        d = depth_image.reshape(H, W).astype(jnp.float32)
        rcx, rcy, rfx, rfy = self.rgb_intr

        kernel = functools.partial(
            _project_kernel, tile_h=TH, scale=self.scale,
            u_mul=self.u_mul, u_add=self.u_add,
            v_mul=self.v_mul, v_add=self.v_add,
            rgb_cx=rcx, rgb_cy=rcy, rgb_fx=rfx, rgb_fy=rfy,
            width=W, height=H, rot=self.rot, trans=self.trans)

        n_tiles = pl.cdiv(H, TH)
        planes = pl.pallas_call(
            kernel,
            out_shape=jax.ShapeDtypeStruct((2, H, W), jnp.int32),
            grid=(n_tiles,),
            in_specs=[pl.BlockSpec((TH, W), lambda i: (i, 0))],
            out_specs=pl.BlockSpec((2, TH, W), lambda i: (0, i, 0)),
            compiler_params=pltpu.CompilerParams(
                dimension_semantics=("parallel",),
                vmem_limit_bytes=self.vmem_limit),
        )(d)

        # Decode the two planes into the 4 corner indices (elementwise, fused
        # by XLA), then 4 chained scatter-mins over the same value vector (no
        # jnp.tile materialization; out-of-frame corners >= H*W are dropped).
        hw = H * W
        flat00 = planes[0].reshape(-1)
        code = planes[1].reshape(-1)
        dxe = jnp.where((code & 4) != 0, hw, code & 1)
        wdye = jnp.where((code & 8) != 0, hw, ((code >> 1) & 1) * W)
        vals = d.reshape(-1)
        # TODO(synk): torch's duplicate-index assignment (`align[py, px] = val`)
        # has an unspecified winner; we use a deterministic scatter-min (same
        # intent: nearest surface wins), so d==0 "holes" and the (0,0) sink for
        # masked pixels always win the min at their target pixel.
        # TODO(synk): if profiling shows the XLA scatter dominating wall clock,
        # replace it with a Pallas scatter-min pass keeping the H*W base in VMEM.
        base = jnp.full((hw,), self.FILL, dtype=jnp.float32)
        aligned = base.at[flat00].min(vals, mode="drop")
        aligned = aligned.at[flat00 + dxe].min(vals, mode="drop")
        aligned = aligned.at[flat00 + wdye].min(vals, mode="drop")
        aligned = aligned.at[flat00 + dxe + wdye].min(vals, mode="drop")
        aligned = jnp.where(aligned == self.FILL, 0.0, aligned)
        return aligned.reshape(H, W, 1)


def _reference(module, depth_image):
    """Pure-JAX reference of the same forward pass (same math ordering and the
    same deterministic scatter-min policy)."""
    H, W = module.height, module.width
    d = depth_image.reshape(H, W).astype(jnp.float32)
    rcx, rcy, rfx, rfy = module.rgb_intr
    col = jnp.arange(W, dtype=jnp.float32)[None, :]
    row = jnp.arange(H, dtype=jnp.float32)[:, None]
    u = col * module.u_mul + module.u_add
    v = row * module.v_mul + module.v_add
    px, py = d * u, d * v
    pz = d if module.scale == 1.0 else d * module.scale
    rot, t = module.rot, module.trans
    X = px * rot[0][0] + py * rot[1][0] + pz * rot[2][0] + t[0]
    Y = px * rot[0][1] + py * rot[1][1] + pz * rot[2][1] + t[1]
    Z = px * rot[0][2] + py * rot[1][2] + pz * rot[2][2] + t[2]
    z0 = Z == 0.0
    inv_z = 1.0 / jnp.where(z0, 1.0, Z)
    x = jnp.where(z0, 0.0, X * inv_z * rfx + rcx)
    y = jnp.where(z0, 0.0, Y * inv_z * rfy + rcy)
    mask = (x < 0.0) | (x >= W) | (y < 0.0) | (y >= H)
    x = jnp.where(mask, 0.0, x)
    y = jnp.where(mask, 0.0, y)
    px0 = (x - 0.5).astype(jnp.int32).reshape(-1)
    px1 = (x + 0.5).astype(jnp.int32).reshape(-1)
    py0 = (y - 0.5).astype(jnp.int32).reshape(-1)
    py1 = (y + 0.5).astype(jnp.int32).reshape(-1)
    val = d.reshape(-1)
    base = jnp.full((H, W), DepthAlignment.FILL, dtype=jnp.float32)
    a0 = base.at[py0, px0].min(val, mode="drop")
    a1 = base.at[py0, px1].min(val, mode="drop")
    a2 = base.at[py1, px0].min(val, mode="drop")
    a3 = base.at[py1, px1].min(val, mode="drop")
    a = jnp.minimum(jnp.minimum(a0, a1), jnp.minimum(a2, a3))
    a = jnp.where(a == DepthAlignment.FILL, 0.0, a)
    return a.reshape(H, W, 1)


if __name__ == "__main__":
    H, W = 16, 16

    # Deterministic "calibration" parameters.
    angle = 0.05
    rotation = np.array([[np.cos(angle), -np.sin(angle), 0.0],
                         [np.sin(angle),  np.cos(angle), 0.0],
                         [0.0,            0.0,           1.0]], dtype=np.float32)
    translation = np.array([0.02, -0.01, 0.0], dtype=np.float32)

    module = DepthAlignment(scale=1.0, width=W, height=H,
                            depth_cx=7.5, depth_cy=7.5,
                            depth_fx=20.0, depth_fy=20.0,
                            rgb_cx=8.0, rgb_cy=8.0,
                            rgb_fx=22.0, rgb_fy=22.0,
                            rotation=rotation, translation=translation)

    # Deterministic example depth image [H, W, 1], with a few zero "holes".
    key = jax.random.PRNGKey(0)
    k1, k2 = jax.random.split(key)
    depth = jax.random.uniform(k1, (H, W, 1), jnp.float32, minval=0.8, maxval=2.0)
    holes = jax.random.uniform(k2, (H, W, 1), jnp.float32) < 0.1
    depth = jnp.where(holes, 0.0, depth)

    out = module(depth)
    out = jax.block_until_ready(out)

    ref = _reference(module, depth)
    assert out.shape == (H, W, 1) and out.dtype == jnp.float32
    np.testing.assert_allclose(np.asarray(out), np.asarray(ref),
                               rtol=1e-5, atol=1e-5)
    print("KERNEL_OK")
</pallas_src>

<mosaic_0001>
module attributes {stable_mosaic.version = 11 : i64} {
  func.func @_project_kernel(%arg0: i32, %arg1: memref<8x16xf32, #tpu.memory_space<vmem>>, %arg2: memref<2x8x16xi32, #tpu.memory_space<vmem>>) attributes {dimension_semantics = [#tpu.dimension_semantics<parallel>], iteration_bounds = array<i64: 2>, scalar_prefetch = 0 : i64, scratch_operands = 0 : i64, tpu.core_type = #tpu.core_type<tc>, window_params = [{transform_indices = @transform_0, window_bounds = array<i64: 8, 16>}, {transform_indices = @transform_1, window_bounds = array<i64: 2, 8, 16>}]} {
    %c0 = arith.constant 0 : index
    %c0_0 = arith.constant 0 : index
    %0 = vector.load %arg1[%c0, %c0_0] : memref<8x16xf32, #tpu.memory_space<vmem>>, vector<8x16xf32>
    %c8_i32 = arith.constant 8 : i32
    %1 = arith.muli %arg0, %c8_i32 : i32
    %2 = tpu.iota {dimensions = array<i32: 1>} : vector<8x16xi32>
    %3 = tpu.iota {dimensions = array<i32: 0>} : vector<8x16xi32>
    %4 = vector.broadcast %1 : i32 to vector<8x16xi32>
    %5 = arith.addi %3, %4 : vector<8x16xi32>
    %6 = arith.sitofp %2 : vector<8x16xi32> to vector<8x16xf32>
    %cst = arith.constant 5.000000e-02 : f32
    %7 = vector.broadcast %cst : f32 to vector<8x16xf32>
    %8 = arith.mulf %6, %7 : vector<8x16xf32>
    %cst_1 = arith.constant -3.750000e-01 : f32
    %9 = vector.broadcast %cst_1 : f32 to vector<8x16xf32>
    %10 = arith.addf %8, %9 : vector<8x16xf32>
    %11 = arith.sitofp %5 : vector<8x16xi32> to vector<8x16xf32>
    %cst_2 = arith.constant 5.000000e-02 : f32
    %12 = vector.broadcast %cst_2 : f32 to vector<8x16xf32>
    %13 = arith.mulf %11, %12 : vector<8x16xf32>
    %cst_3 = arith.constant -3.750000e-01 : f32
    %14 = vector.broadcast %cst_3 : f32 to vector<8x16xf32>
    %15 = arith.addf %13, %14 : vector<8x16xf32>
    %16 = arith.mulf %0, %10 : vector<8x16xf32>
    %17 = arith.mulf %0, %15 : vector<8x16xf32>
    %cst_4 = arith.constant 0.998750269 : f32
    %18 = vector.broadcast %cst_4 : f32 to vector<8x16xf32>
    %19 = arith.mulf %16, %18 : vector<8x16xf32>
    %cst_5 = arith.constant 0.0499791689 : f32
    %20 = vector.broadcast %cst_5 : f32 to vector<8x16xf32>
    %21 = arith.mulf %17, %20 : vector<8x16xf32>
    %22 = arith.addf %19, %21 : vector<8x16xf32>
    %cst_6 = arith.constant 0.000000e+00 : f32
    %23 = vector.broadcast %cst_6 : f32 to vector<8x16xf32>
    %24 = arith.mulf %0, %23 : vector<8x16xf32>
    %25 = arith.addf %22, %24 : vector<8x16xf32>
    %cst_7 = arith.constant 2.000000e-02 : f32
    %26 = vector.broadcast %cst_7 : f32 to vector<8x16xf32>
    %27 = arith.addf %25, %26 : vector<8x16xf32>
    %cst_8 = arith.constant -0.0499791689 : f32
    %28 = vector.broadcast %cst_8 : f32 to vector<8x16xf32>
    %29 = arith.mulf %16, %28 : vector<8x16xf32>
    %cst_9 = arith.constant 0.998750269 : f32
    %30 = vector.broadcast %cst_9 : f32 to vector<8x16xf32>
    %31 = arith.mulf %17, %30 : vector<8x16xf32>
    %32 = arith.addf %29, %31 : vector<8x16xf32>
    %cst_10 = arith.constant 0.000000e+00 : f32
    %33 = vector.broadcast %cst_10 : f32 to vector<8x16xf32>
    %34 = arith.mulf %0, %33 : vector<8x16xf32>
    %35 = arith.addf %32, %34 : vector<8x16xf32>
    %cst_11 = arith.constant -0.00999999977 : f32
    %36 = vector.broadcast %cst_11 : f32 to vector<8x16xf32>
    %37 = arith.addf %35, %36 : vector<8x16xf32>
    %cst_12 = arith.constant 0.000000e+00 : f32
    %38 = vector.broadcast %cst_12 : f32 to vector<8x16xf32>
    %39 = arith.mulf %16, %38 : vector<8x16xf32>
    %cst_13 = arith.constant 0.000000e+00 : f32
    %40 = vector.broadcast %cst_13 : f32 to vector<8x16xf32>
    %41 = arith.mulf %17, %40 : vector<8x16xf32>
    %42 = arith.addf %39, %41 : vector<8x16xf32>
    %cst_14 = arith.constant 1.000000e+00 : f32
    %43 = vector.broadcast %cst_14 : f32 to vector<8x16xf32>
    %44 = arith.mulf %0, %43 : vector<8x16xf32>
    %45 = arith.addf %42, %44 : vector<8x16xf32>
    %cst_15 = arith.constant 0.000000e+00 : f32
    %46 = vector.broadcast %cst_15 : f32 to vector<8x16xf32>
    %47 = arith.addf %45, %46 : vector<8x16xf32>
    %cst_16 = arith.constant 0.000000e+00 : f32
    %48 = vector.broadcast %cst_16 : f32 to vector<8x16xf32>
    %cst_17 = arith.constant 0.000000e+00 : f32
    %49 = vector.broadcast %cst_17 : f32 to vector<8x16xf32>
    %50 = arith.cmpf oeq, %47, %49 : vector<8x16xf32>
    %cst_18 = arith.constant 1.000000e+00 : f32
    %51 = vector.broadcast %cst_18 : f32 to vector<8x16xf32>
    %52 = arith.select %50, %51, %47 : vector<8x16xi1>, vector<8x16xf32>
    %cst_19 = arith.constant 1.000000e+00 : f32
    %53 = vector.broadcast %cst_19 : f32 to vector<8x16xf32>
    %54 = arith.divf %53, %52 : vector<8x16xf32>
    %55 = arith.mulf %27, %54 : vector<8x16xf32>
    %cst_20 = arith.constant 2.200000e+01 : f32
    %56 = vector.broadcast %cst_20 : f32 to vector<8x16xf32>
    %57 = arith.mulf %55, %56 : vector<8x16xf32>
    %cst_21 = arith.constant 8.000000e+00 : f32
    %58 = vector.broadcast %cst_21 : f32 to vector<8x16xf32>
    %59 = arith.addf %57, %58 : vector<8x16xf32>
    %60 = arith.select %50, %48, %59 : vector<8x16xi1>, vector<8x16xf32>
    %61 = arith.mulf %37, %54 : vector<8x16xf32>
    %cst_22 = arith.constant 2.200000e+01 : f32
    %62 = vector.broadcast %cst_22 : f32 to vector<8x16xf32>
    %63 = arith.mulf %61, %62 : vector<8x16xf32>
    %cst_23 = arith.constant 8.000000e+00 : f32
    %64 = vector.broadcast %cst_23 : f32 to vector<8x16xf32>
    %65 = arith.addf %63, %64 : vector<8x16xf32>
    %66 = arith.select %50, %48, %65 : vector<8x16xi1>, vector<8x16xf32>
    %cst_24 = arith.constant 0.000000e+00 : f32
    %67 = vector.broadcast %cst_24 : f32 to vector<8x16xf32>
    %68 = arith.cmpf olt, %60, %67 : vector<8x16xf32>
    %cst_25 = arith.constant 1.600000e+01 : f32
    %69 = vector.broadcast %cst_25 : f32 to vector<8x16xf32>
    %70 = arith.cmpf oge, %60, %69 : vector<8x16xf32>
    %71 = arith.ori %68, %70 : vector<8x16xi1>
    %cst_26 = arith.constant 0.000000e+00 : f32
    %72 = vector.broadcast %cst_26 : f32 to vector<8x16xf32>
    %73 = arith.cmpf olt, %66, %72 : vector<8x16xf32>
    %74 = arith.ori %71, %73 : vector<8x16xi1>
    %cst_27 = arith.constant 1.600000e+01 : f32
    %75 = vector.broadcast %cst_27 : f32 to vector<8x16xf32>
    %76 = arith.cmpf oge, %66, %75 : vector<8x16xf32>
    %77 = arith.ori %74, %76 : vector<8x16xi1>
    %78 = arith.select %77, %48, %60 : vector<8x16xi1>, vector<8x16xf32>
    %79 = arith.select %77, %48, %66 : vector<8x16xi1>, vector<8x16xf32>
    %cst_28 = arith.constant 5.000000e-01 : f32
    %80 = vector.broadcast %cst_28 : f32 to vector<8x16xf32>
    %81 = arith.subf %78, %80 : vector<8x16xf32>
    %82 = arith.fptosi %81 : vector<8x16xf32> to vector<8x16xi32>
    %cst_29 = arith.constant 5.000000e-01 : f32
    %83 = vector.broadcast %cst_29 : f32 to vector<8x16xf32>
    %84 = arith.addf %78, %83 : vector<8x16xf32>
    %85 = arith.fptosi %84 : vector<8x16xf32> to vector<8x16xi32>
    %cst_30 = arith.constant 5.000000e-01 : f32
    %86 = vector.broadcast %cst_30 : f32 to vector<8x16xf32>
    %87 = arith.subf %79, %86 : vector<8x16xf32>
    %88 = arith.fptosi %87 : vector<8x16xf32> to vector<8x16xi32>
    %cst_31 = arith.constant 5.000000e-01 : f32
    %89 = vector.broadcast %cst_31 : f32 to vector<8x16xf32>
    %90 = arith.addf %79, %89 : vector<8x16xf32>
    %91 = arith.fptosi %90 : vector<8x16xf32> to vector<8x16xi32>
    %c16_i32 = arith.constant 16 : i32
    %92 = vector.broadcast %c16_i32 : i32 to vector<8x16xi32>
    %93 = arith.muli %88, %92 : vector<8x16xi32>
    %94 = arith.addi %93, %82 : vector<8x16xi32>
    %c0_32 = arith.constant 0 : index
    %c0_33 = arith.constant 0 : index
    %c0_34 = arith.constant 0 : index
    %95 = vector.load %arg2[%c0_32, %c0_33, %c0_34] : memref<2x8x16xi32, #tpu.memory_space<vmem>>, vector<1x8x16xi32>
    %96 = vector.shape_cast %95 : vector<1x8x16xi32> to vector<8x16xi32>
    %97 = vector.shape_cast %94 : vector<8x16xi32> to vector<1x8x16xi32>
    tpu.vector_store %arg2[%c0_32, %c0_33, %c0_34], %97 {strides = array<i32>} : memref<2x8x16xi32, #tpu.memory_space<vmem>>, vector<1x8x16xi32>,
    %98 = arith.subi %85, %82 : vector<8x16xi32>
    %99 = arith.subi %91, %88 : vector<8x16xi32>
    %c16_i32_35 = arith.constant 16 : i32
    %100 = vector.broadcast %c16_i32_35 : i32 to vector<8x16xi32>
    %101 = arith.cmpi sge, %85, %100 : vector<8x16xi32>
    %102 = arith.extui %101 : vector<8x16xi1> to vector<8x16xi32>
    %c16_i32_36 = arith.constant 16 : i32
    %103 = vector.broadcast %c16_i32_36 : i32 to vector<8x16xi32>
    %104 = arith.cmpi sge, %91, %103 : vector<8x16xi32>
    %105 = arith.extui %104 : vector<8x16xi1> to vector<8x16xi32>
    %c2_i32 = arith.constant 2 : i32
    %106 = vector.broadcast %c2_i32 : i32 to vector<8x16xi32>
    %107 = arith.muli %99, %106 : vector<8x16xi32>
    %108 = arith.addi %98, %107 : vector<8x16xi32>
    %c4_i32 = arith.constant 4 : i32
    %109 = vector.broadcast %c4_i32 : i32 to vector<8x16xi32>
    %110 = arith.muli %102, %109 : vector<8x16xi32>
    %111 = arith.addi %108, %110 : vector<8x16xi32>
    %c8_i32_37 = arith.constant 8 : i32
    %112 = vector.broadcast %c8_i32_37 : i32 to vector<8x16xi32>
    %113 = arith.muli %105, %112 : vector<8x16xi32>
    %114 = arith.addi %111, %113 : vector<8x16xi32>
    %c1 = arith.constant 1 : index
    %c0_38 = arith.constant 0 : index
    %c0_39 = arith.constant 0 : index
    %115 = vector.load %arg2[%c1, %c0_38, %c0_39] : memref<2x8x16xi32, #tpu.memory_space<vmem>>, vector<1x8x16xi32>
    %116 = vector.shape_cast %115 : vector<1x8x16xi32> to vector<8x16xi32>
    %117 = vector.shape_cast %114 : vector<8x16xi32> to vector<1x8x16xi32>
    tpu.vector_store %arg2[%c1, %c0_38, %c0_39], %117 {strides = array<i32>} : memref<2x8x16xi32, #tpu.memory_space<vmem>>, vector<1x8x16xi32>,
    return
  }
  func.func @transform_0(%arg0: i32) -> (i32, i32) {
    %c0_i32 = arith.constant 0 : i32
    %c0_i32_0 = arith.constant 0 : i32
    return %arg0, %c0_i32 : i32, i32
  }
  func.func @transform_1(%arg0: i32) -> (i32, i32, i32) {
    %c0_i32 = arith.constant 0 : i32
    %c0_i32_0 = arith.constant 0 : i32
    %c0_i32_1 = arith.constant 0 : i32
    return %c0_i32, %arg0, %c0_i32_0 : i32, i32, i32
  }
}

</mosaic_0001>

<bundles_post_ra>
// kernel: tpu_custom_call.1
= control target key start
LH: loop header
LB: loop body
LE: loop exit
PB: predicated region body
PF: predicated region fallthrough
CT: control target
= control target key end

     0   :  { %6 = vsyncpa [#allocation3], 0  ;;  %s645_s0 = inlined_call_operand.hbm [shape: f32[16,16], index: 0, kind: input, shape index: {}]   ;;  %s646_s1 = inlined_call_operand.hbm [shape: s32[2,16,16], index: 1, kind: output, shape index: {}]  }
   0x1   :  { %8 = vsyncpa [#allocation3 + $0x1], 0 }
   0x2   :  { %9 = vsyncpa [#allocation4], 0 }
   0x3   :  { %11 = vsyncpa [#allocation4 + $0x1], 0  ;;  %s483_s6 = smov 0   ;;  %s485_s7 = smov 0  }
   0x4   :  { %s487_s8 = smov 0   ;;  %s489_s9 = smov 0  }
   0x5 LB: > { %s504_s10 = sadd.s32 4294967295, %s465_s9   ;;  %s297_s11 = sadd.s32 4294967294, %s465_s9   ;;  %s465_s9 = sphi %s489_s9, %s663_s9   ;;  %s461_s8 = sphi %s487_s8, %s662_s8   ;;  %s457_s7 = sphi %s485_s7, %s661_s7   ;;  %s453_s6 = sphi %s483_s6, %s660_s6  }
   0x6   : > { %s508_s12 = sadd.s32 1, %s465_s9   ;;  %s24_s13 = sadd.s32 1, %s461_s8 }
   0x7   : > { %s21_s14 = ssub.s32 %s465_s9, %s508_s12  ;;  %p31_p0 = scmp.ne.s32.totalorder %s461_s8, %s457_s7 }
   0x8   : > { %p22_p1 = scmp.eq.s32.totalorder %s21_s14, 0  ;;  %p32_p2 = scmp.eq.s32.totalorder %s465_s9, 0 }
   0x9   : > { %p37_p3 = scmp.ne.s32.totalorder %s457_s7, %s453_s6  ;;  %p38_p4 = scmp.eq.s32.totalorder %s504_s10, 0 }
   0xa   : > { %s520_s15 = scalar_select %p22_p1, %s461_s8, %s24_s13  }
   0xb   : > { %p522_p5 = por %p32_p2, %p31_p0  ;;  %p526_p6 = por %p38_p4, %p37_p3 }
   0xc   : > { %p61_p7 = scmp.eq.s32.totalorder %s504_s10, 1  ;;  %p67_p8 = scmp.eq.s32.totalorder %s297_s11, 1 }
   0xd   : > { %s650_s17 = scalar_select %p526_p6, 1, 0 }
   0xe   : > { %p333_p10 = scmp.lt.s32.totalorder %s465_s9, 2  ;;  %p533_p11 = por %p61_p7, %p31_p0 }
   0xf   : > { %p537_p12 = por %p67_p8, %p37_p3  ;;  %s87_s20 = sand.u32 1, %s461_s8  }
  0x10   : > { %s651_s18 = scalar_select %p533_p11, 1, 0 }
  0x11   : > { %s652_s19 = scalar_select %p537_p12, 1, 0 }
  0x12   : > { %s301_s21 = sshll.u32 %s465_s9, 7  ;;  %s300_s22 = sshll.u32 %s87_s20, 3 }
  0x13   : > { %s546_s25 = scalar_lea.hbm %s645_s0, %s301_s21  ;;  %s91_s26 = scalar_lea.vmem [#allocation2], %s300_s22 }
  0x14   : > { %s98_s27 = sshll.u32 %s91_s26, 4  ;;  %p550_p13 = pnand %p333_p10, %p522_p5  ;;  %s554_s27 = int_to_ptr.vmem [resolvable:$true] %s98_s27 }
  0x15   : > { %s88_s29 = scalar_lea.sflag [#allocation3], %s87_s20  ;;  %s373_s30 = scalar_lea.hbm %s546_s25, 128 }
  0x16   : > { %p374_p2 = scmp.ne.s32.totalorder %s546_s25, %s373_s30  ;;  %p375_p3 = pneg %p550_p13 }
  0x17   : > { %s378_s4 = scalar_lea.hbm %s645_s0, 256  ;;  %p379_p5 = scmp.lt.s32.totalorder %s546_s25, %s645_s0 }
  0x18   : > { %p376_p4 = pnand %p375_p3, %p374_p2  ;;  %p380_p8 = scmp.lt.s32.totalorder %s378_s4, %s373_s30 }
  0x1a   : > { %p377_p7 = pneg %p376_p4  ;;  %p381_p10 = por %p380_p8, %p379_p5 }
  0x1c   : > { %p382_p9 = pnand %p381_p10, %p377_p7 }
  0x1e   : > { %385 = shalt.err (!%p382_p9)
}
  0x1f   : > { %s386_s13 = scalar_lea.vmem %s554_s27, 128  ;;  %s467_s14 = smov [#allocation2]  }
  0x20   : > { %p387_p0 = scmp.ne.s32.totalorder %s554_s27, %s386_s13  ;;  %s391_s16 = sshll.u32 %s467_s14, 4  ;;  %s392_s16 = int_to_ptr.vmem [resolvable:$false] %s391_s16 }
  0x21   : > { %s393_s20 = scalar_lea.vmem %s392_s16, 256  ;;  %p394_p4 = scmp.lt.s32.totalorder %s554_s27, %s392_s16 }
  0x22   : > { %p389_p1 = pnand %p387_p0, %p375_p3  ;;  %p395_p12 = scmp.lt.s32.totalorder %s393_s20, %s386_s13 }
  0x24   : > { %p390_p2 = pneg %p389_p1  ;;  %p396_p11 = por %p395_p12, %p394_p4 }
  0x26   : > { %p397_p6 = pnand %p396_p11, %p390_p2 }
  0x28   : > { %400 = shalt.err (!%p397_p6)
}
  0x29   : > { %328 = dma.hbm_to_vmem [thread:$0]  (!%p550_p13), %s546_s25, 128, %s554_s27, %s88_s29  }
  0x2a   : > { %p654_p9 = scmp.lt.s32.totalorder %s465_s9, 3  ;;  %p655_p7 = scmp.ge.s32.totalorder %s465_s9, 1 }
  0x2c   : > { %p104_p0 = pnand %p655_p7, %p654_p9 }
  0x2d   : > { %s581_s21 = sand.u32 (!%p104_p0), 1, %s457_s7   ;;  %p656_p6 = scmp.ne.s32.totalorder (!%p104_p0), %s650_s17, 0 }
  0x2e   : > { %107 = sbr.rel (%p104_p0) target bundleno = 131 (0x83), region = 24  ;;  %s303_s22 = sshll.u32 (!%p104_p0), %s581_s21, 3 }
  0x2f   : > { %s110_s23 = scalar_lea.sflag (!%p104_p0), [#allocation3], %s581_s21  ;;  %s113_s24 = scalar_lea.vmem (!%p104_p0), [#allocation2], %s303_s22 }
  0x33   : > { %444 = dma.done.wait (%p656_p6), %s110_s23, 128  }
  0x34   : > { %446 = vsyncadd (%p656_p6), %s110_s23, 4294967168  ;;  %s305_s25 = sshll.u32 %s504_s10, 3  ;;  %v134_v0 = vlaneseq  ;;  %v132_v8 = vld [vmem:[%s113_s24] sm:$0xff]  ;;  %s304_s17 = sshll.u32 %s581_s21, 4  ;;  %vm195_vm9 = vcmask 130048   ;;  %v468_v56 = vmov 0  }
  0x35   : > { %v138_v1 = vstv %s305_s25  ;;  %v151_v24 = vmul.f32 0.0, %v132_v8  ;;  %s131_s26 = scalar_lea.vmem [#allocation5], %s304_s17  ;;  %s310_s28 = sshll.u32 %s504_s10, 7 }
  0x36   : > { %v135_v2 = vand.u32 127, %v134_v0  ;;  %v137_v3 = vshrl.u32 %v134_v0, 7  ;;  %s224_s27 = sshll.u32 %s131_s26, 4  ;;  %s601_s2 = scalar_lea.hbm %s646_s1, %s310_s28  ;;  %s596_s27 = int_to_ptr.vmem [resolvable:$true] %s224_s27 }
  0x37   : > { %s212_s3 = scalar_lea.sflag [#allocation4], %s581_s21  ;;  %s401_s4 = scalar_lea.vmem %s596_s27, 256 }
  0x38   : > { %v139_v4 = vadd.s32 %v138_v1, %v137_v3  ;;  %v140_v5 = vcvt.s32.f32 %v135_v2  ;;  %p402_p11 = scmp.ne.s32.totalorder %s596_s27, %s401_s4  ;;  %p657_p12 = scmp.ne.s32.totalorder %s651_s18, 0 }
  0x39   : > { %s469_s10 = smov [#allocation5]  }
  0x3a   : > { %v141_v6 = vmul.f32 0.05, %v140_v5  ;;  %v143_v7 = vcvt.s32.f32 %v139_v4  ;;  %p403_p13 = pnand %p402_p11, %p657_p12  ;;  %s405_s5 = sshll.u32 %s469_s10, 4  ;;  %s406_s5 = int_to_ptr.vmem [resolvable:$false] %s405_s5 }
  0x3b   : > { %s407_s11 = scalar_lea.vmem %s406_s5, 512  ;;  %p408_p3 = scmp.lt.s32.totalorder %s596_s27, %s406_s5 }
  0x3c   : > { %v142_v9 = vadd.f32 -0.375, %v141_v6  ;;  %v144_v10 = vmul.f32 0.05, %v143_v7  ;;  %p404_p1 = pneg %p403_p13  ;;  %p409_p5 = scmp.lt.s32.totalorder %s407_s11, %s401_s4 }
  0x3e   : > { %v145_v11 = vadd.f32 -0.375, %v144_v10  ;;  %v146_v12 = vmul.f32 %v142_v9, %v132_v8  ;;  %p410_p8 = por %p409_p5, %p408_p3 }
  0x40   : > { %v147_v13 = vmul.f32 %v145_v11, %v132_v8  ;;  %v159_v14 = vmul.f32 0.0, %v146_v12  ;;  %v148_v18 = vmul.f32 0.99875027, %v146_v12  ;;  %v154_v19 = vmul.f32 -0.04997917, %v146_v12  ;;  %p411_p10 = pnand %p410_p8, %p404_p1 }
  0x42   : > { %v160_v15 = vmul.f32 0.0, %v147_v13  ;;  %v149_v20 = vmul.f32 0.04997917, %v147_v13  ;;  %v155_v21 = vmul.f32 0.99875027, %v147_v13 }
  0x44   : > { %v161_v16 = vadd.f32 %v160_v15, %v159_v14  ;;  %v150_v23 = vadd.f32 %v149_v20, %v148_v18  ;;  %v156_v25 = vadd.f32 %v155_v21, %v154_v19 }
  0x46   : > { %v162_v17 = vadd.f32 %v161_v16, %v132_v8  ;;  %v152_v26 = vadd.f32 %v151_v24, %v150_v23  ;;  %v157_v27 = vadd.f32 %v156_v25, %v151_v24 }
  0x48   : > { %vm164_vm0 = vcmp.eq.f32.partialorder %v162_v17, 0.0  ;;  %v153_v28 = vadd.f32 0.02, %v152_v26  ;;  %v158_v29 = vadd.f32 -0.01, %v157_v27 }
  0x49   : > { %v165_v22 = vsel %vm164_vm0, 1.0, %v162_v17 }
  0x4a   : > { %371 = vrcp.f32 %v165_v22 }
  0x57   : > { %v372_v30 = vpop.eup %371 }
  0x58   : > { %v168_v31 = vmul.f32 %v372_v30, %v153_v28  ;;  %v172_v32 = vmul.f32 %v372_v30, %v158_v29 }
  0x5a   : > { %v169_v33 = vmul.f32 22.0, %v168_v31  ;;  %v173_v34 = vmul.f32 22.0, %v172_v32 }
  0x5c   : > { %v170_v35 = vadd.f32 8.0, %v169_v33  ;;  %v174_v36 = vadd.f32 8.0, %v173_v34 }
  0x5e   : > { %v171_v37 = vsel %vm164_vm0, 0.0, %v170_v35  ;;  %v175_v38 = vsel %vm164_vm0, 0.0, %v174_v36 }
  0x5f   : > { %vm176_vm1 = vcmp.lt.f32.partialorder %v171_v37, 0.0  ;;  %vm177_vm2 = vcmp.ge.f32.partialorder %v171_v37, 16.0  ;;  %vm179_vm3 = vcmp.lt.f32.partialorder %v175_v38, 0.0  ;;  %vm181_vm4 = vcmp.ge.f32.partialorder %v175_v38, 16.0 }
  0x60   : > { %vm178_vm5 = vmor %vm176_vm1, %vm177_vm2 }
  0x61   : > { %vm180_vm6 = vmor %vm178_vm5, %vm179_vm3 }
  0x62   : > { %vm182_vm7 = vmor %vm180_vm6, %vm181_vm4 }
  0x63   : > { %v183_v39 = vsel %vm182_vm7, 0.0, %v171_v37  ;;  %v184_v40 = vsel %vm182_vm7, 0.0, %v175_v38 }
  0x64   : > { %v306_v41 = vadd.f32 -0.5, %v183_v39  ;;  %v187_v42 = vadd.f32 0.5, %v183_v39  ;;  %v307_v43 = vadd.f32 -0.5, %v184_v40  ;;  %v191_v44 = vadd.f32 0.5, %v184_v40 }
  0x66   : > { %v313_v45 = vtrunc.f32 %v306_v41  ;;  %v315_v46 = vtrunc.f32 %v187_v42  ;;  %v317_v47 = vtrunc.f32 %v307_v43  ;;  %v319_v48 = vtrunc.f32 %v191_v44 }
  0x68   : > { %v314_v49 = vcvt.f32.s32 %v313_v45  ;;  %v316_v50 = vcvt.f32.s32 %v315_v46  ;;  %v318_v51 = vcvt.f32.s32 %v317_v47  ;;  %v320_v52 = vcvt.f32.s32 %v319_v48 }
  0x6a   : > { %v193_v53 = vmul.u32 16, %v318_v51  ;;  %v197_v54 = vsub.s32 %v316_v50, %v314_v49  ;;  %v198_v55 = vsub.s32 %v320_v52, %v318_v51  ;;  %vm199_vm8 = vcmp.ge.s32.totalorder %v316_v50, 16 }
  0x6b   : > { %v200_v57 = vsel %vm199_vm8, 1, %v468_v56  ;;  %vm201_vm10 = vcmp.ge.s32.totalorder %v320_v52, 16 }
  0x6c   : > { %v194_v58 = vadd.s32 %v314_v49, %v193_v53  ;;  %v202_v59 = vsel %vm201_vm10, 1, %v468_v56  ;;  %v203_v60 = vmul.u32 2, %v198_v55  ;;  %v205_v61 = vmul.u32 4, %v200_v57 }
  0x6d   : > { %v207_v63 = vmul.u32 8, %v202_v59 }
  0x6e   : > { %196 = vst.msk [vmem:[%s131_s26] sm:$0xff] %vm195_vm9, %v194_v58  ;;  %v204_v62 = vadd.s32 %v203_v60, %v197_v54 }
  0x70   : > { %v206_v0 = vadd.s32 %v205_v61, %v204_v62 }
  0x72   : > { %v208_v1 = vadd.s32 %v207_v63, %v206_v0 }
  0x74   : > { %308 = vst.msk [vmem:[%s131_s26 + $0x8] sm:$0xff] %vm195_vm9, %v208_v1 }
  0x75   : > { %414 = shalt.err (!%p411_p10)
}
  0x76   : > { %s415_s13 = scalar_lea.hbm %s601_s2, 256  ;;  %s419_s20 = scalar_lea.hbm %s646_s1, 512 }
  0x77   : > { %p416_p2 = scmp.ne.s32.totalorder %s601_s2, %s415_s13  ;;  %p420_p7 = scmp.lt.s32.totalorder %s601_s2, %s646_s1 }
  0x78   : > { %p421_p0 = scmp.lt.s32.totalorder %s419_s20, %s415_s13 }
  0x79   : > { %p417_p4 = pnand %p416_p2, %p657_p12 }
  0x7a   : > { %p422_p6 = por %p421_p0, %p420_p7 }
  0x7b   : > { %p418_p9 = pneg %p417_p4 }
  0x7d   : > { %p423_p11 = pnand %p422_p6, %p418_p9 }
  0x7f   : > { %426 = shalt.err (!%p423_p11)
}
  0x80   : > { %s470_s24 = smov 128   ;;  %s471_s25 = smov 256  }
  0x81   : > { %s472_s17 = smov 8  }
  0x82   : > { %323 = dma.vmem_to_hbm [thread:$0]  (%p657_p12), %s596_s27, 256, %s601_s2, %s212_s3, %s470_s24, %s471_s25, %s472_s17  }
  0x83 PF: > { %s239_s26 = sand.u32 1, %s453_s6   ;;  %p658_p13 = scmp.ne.s32.totalorder %s652_s19, 0 }
  0x84   : > { %p659_p1 = scmp.ge.s32.totalorder %s465_s9, 2  ;;  %s240_s28 = scalar_lea.sflag [#allocation4], %s239_s26 }
  0x86   : > { %p330_p3 = pnand %p659_p1, %p658_p13 }
  0x88   : > { %p331_p5 = pneg %p330_p3 }
  0x8a   : > { %448 = dma.done.wait (%p331_p5), %s240_s28, 256  }
  0x8b   : > { %450 = vsyncadd (%p331_p5), %s240_s28, 4294967040  ;;  %p14_p8 = scmp.ge.s32.totalorder %s508_s12, 4   ;;  %s660_s6 = smov %s457_s7 }
  0x8c   : > { %s661_s7 = smov %s461_s8  ;;  %s662_s8 = smov %s520_s15 }
  0x8d   : > { %s663_s9 = smov %s508_s12  ;;  %16 = sbr.rel (!%p14_p8) target bundleno = 5 (0x5), region = 70 }
  0x92   :  { %245 = vsyncpa [#allocation3], 1 }
  0x93   :  { %247 = vsyncpa [#allocation3 + $0x1], 1 }
  0x94   :  { %248 = vsyncpa [#allocation4], 1 }
  0x95   :  { %250 = vsyncpa [#allocation4 + $0x1], 1 }

</bundles_post_ra>
